<compile_context>
chip_gen: v7x
topology: tpu7x:2x2x1
jax: 0.10.0
libtpu: 0.0.40
codegen_flags: <defaults>
</compile_context>

<pallas_src>
import jax
import jax.numpy as jnp
from jax.experimental import pallas as pl
from jax.experimental.pallas import tpu as pltpu


def _round_up(a, b):
    return -(-a // b) * b


def _leaky_relu(x, slope=0.01):
    # nn.LeakyReLU default negative_slope = 0.01
    return jnp.where(x > 0, x, slope * x)


def gating_kernel(x_ref, w1_ref, b1_ref, w2_ref, b2_ref,
                  w3_ref, b3_ref, w4_ref, b4_ref, o_ref):
    cdt = w1_ref.dtype            # MXU input dtype (bf16); accumulation is f32
    x = x_ref[...].astype(cdt)

    # layer1 + relu            (dropout1 -> identity at inference)
    h = jnp.dot(x, w1_ref[...], preferred_element_type=jnp.float32) + b1_ref[...]
    h = jnp.maximum(h, 0.0)

    # layer2 + leaky_relu      (dropout2 -> identity)
    h = jnp.dot(h.astype(cdt), w2_ref[...], preferred_element_type=jnp.float32) + b2_ref[...]
    h = _leaky_relu(h)

    # layer3 + leaky_relu      (dropout3 -> identity)
    h = jnp.dot(h.astype(cdt), w3_ref[...], preferred_element_type=jnp.float32) + b3_ref[...]
    h = _leaky_relu(h)

    # layer4 + softmax over experts (padded expert lanes carry -1e30 bias -> exp == 0)
    logits = jnp.dot(h.astype(cdt), w4_ref[...], preferred_element_type=jnp.float32) + b4_ref[...]
    m = jnp.max(logits, axis=1, keepdims=True)
    e = jnp.exp(logits - m)
    sm = e * pl.reciprocal(jnp.sum(e, axis=1, keepdims=True), approx=True)

    # Store only the E valid expert columns (masked vst; saves 16x HBM writeback).
    o_ref[...] = sm[:, :o_ref.shape[-1]]


def gating_forward(x, params, *, tm=2048):
    """x: (B, input_dim) f32.  Returns (B, num_experts) f32 softmax weights.

    tm: batch tile (rows per grid step).  Clamped to the 8-rounded batch; when
    the batch exceeds one tile, the grid always has >= 2 steps so the
    'parallel' batch axis can shard across both TensorCores on v7x.
    """
    w1, b1, w2, b2, w3, b3, w4, b4 = params
    B, D = x.shape
    E = w4.shape[1]

    # Lane-dense logits inside the kernel: pad experts to a multiple of 128.
    # Padded columns get a -1e30 bias so their softmax contribution is 0.
    E_pad = _round_up(E, 128)
    if E_pad != E:
        w4 = jnp.pad(w4, ((0, 0), (0, E_pad - E)))
        b4 = jnp.pad(b4, ((0, 0), (0, E_pad - E)), constant_values=-1e30)

    # Batch tile: multiple of 8 sublanes; partial last block is handled by
    # Pallas (OOB reads are garbage rows -> row-wise discarded; OOB writes masked).
    tm = _round_up(max(8, min(int(tm), _round_up(B, 8))), 8)
    if B > 8 and pl.cdiv(B, tm) < 2:
        tm = _round_up(pl.cdiv(B, 2), 8)     # keep >= 2 grid steps (v7x megacore)
    grid_n = pl.cdiv(B, tm)

    # Weights/biases: constant index_map -> resident in VMEM across grid steps.
    resident = lambda a: pl.BlockSpec(a.shape, lambda i: (0,) * a.ndim)

    out = pl.pallas_call(
        gating_kernel,
        out_shape=jax.ShapeDtypeStruct((B, E), jnp.float32),
        grid=(grid_n,),
        in_specs=[pl.BlockSpec((tm, D), lambda i: (i, 0)),
                  resident(w1), resident(b1), resident(w2), resident(b2),
                  resident(w3), resident(b3), resident(w4), resident(b4)],
        out_specs=pl.BlockSpec((tm, E), lambda i: (i, 0)),
        compiler_params=pltpu.CompilerParams(
            dimension_semantics=("parallel",)),
    )(x, w1, b1, w2, b2, w3, b3, w4, b4)

    return out


def init_params(key, input_dim, num_experts, compute_dtype=jnp.bfloat16):
    """PyTorch nn.Linear-style init (uniform +/- 1/sqrt(fan_in)).
    Weights stored (in_features, out_features) in the matmul dtype; biases f32."""
    dims = [(input_dim, 128), (128, 256), (256, 128), (128, num_experts)]
    params = []
    for fin, fout in dims:
        kw, kb, key = jax.random.split(key, 3)
        bound = 1.0 / float(fin) ** 0.5
        w = jax.random.uniform(kw, (fin, fout), jnp.float32, -bound, bound)
        b = jax.random.uniform(kb, (1, fout), jnp.float32, -bound, bound)
        params += [w.astype(compute_dtype), b]
    return tuple(params)


def reference_forward(x, params):
    """Pure-JAX reference mirroring the kernel's dtype handling (bf16 matmuls, f32 acc)."""
    w1, b1, w2, b2, w3, b3, w4, b4 = params
    cdt, f32 = w1.dtype, jnp.float32
    h = jnp.maximum(jnp.dot(x.astype(cdt), w1, preferred_element_type=f32) + b1, 0.0)
    h = _leaky_relu(jnp.dot(h.astype(cdt), w2, preferred_element_type=f32) + b2)
    h = _leaky_relu(jnp.dot(h.astype(cdt), w3, preferred_element_type=f32) + b3)
    logits = jnp.dot(h.astype(cdt), w4, preferred_element_type=f32) + b4
    return jax.nn.softmax(logits, axis=1)


if __name__ == "__main__":
    key = jax.random.PRNGKey(0)
    kx, kx2, kp = jax.random.split(key, 3)

    input_dim, num_experts = 32, 8
    params = init_params(kp, input_dim, num_experts)

    # Small case matching the module's natural test shape (single grid step).
    batch = 8
    x = jax.random.normal(kx, (batch, input_dim), jnp.float32)
    out = gating_forward(x, params)
    jax.block_until_ready(out)
    ref = reference_forward(x, params)
    assert out.shape == (batch, num_experts)
    assert jnp.allclose(out, ref, atol=5e-3, rtol=5e-3), "mismatch vs reference (small)"
    assert jnp.allclose(jnp.sum(out, axis=1), 1.0, atol=5e-3), "rows must sum to 1 (small)"

    # Larger, non-multiple batch: exercises the multi-step grid + partial last block.
    batch2 = 300
    x2 = jax.random.normal(kx2, (batch2, input_dim), jnp.float32)
    out2 = gating_forward(x2, params, tm=128)     # grid of 3 steps, last block partial
    jax.block_until_ready(out2)
    ref2 = reference_forward(x2, params)
    assert out2.shape == (batch2, num_experts)
    assert jnp.allclose(out2, ref2, atol=5e-3, rtol=5e-3), "mismatch vs reference (tiled)"
    assert jnp.allclose(jnp.sum(out2, axis=1), 1.0, atol=5e-3), "rows must sum to 1 (tiled)"

    print("KERNEL_OK")
</pallas_src>

<mosaic_0001>
module attributes {stable_mosaic.version = 11 : i64} {
  func.func @gating_kernel(%arg0: i32, %arg1: memref<8x32xf32, #tpu.memory_space<vmem>>, %arg2: memref<32x128xbf16, #tpu.memory_space<vmem>>, %arg3: memref<1x128xf32, #tpu.memory_space<vmem>>, %arg4: memref<128x256xbf16, #tpu.memory_space<vmem>>, %arg5: memref<1x256xf32, #tpu.memory_space<vmem>>, %arg6: memref<256x128xbf16, #tpu.memory_space<vmem>>, %arg7: memref<1x128xf32, #tpu.memory_space<vmem>>, %arg8: memref<128x128xbf16, #tpu.memory_space<vmem>>, %arg9: memref<1x128xf32, #tpu.memory_space<vmem>>, %arg10: memref<8x8xf32, #tpu.memory_space<vmem>>) attributes {dimension_semantics = [#tpu.dimension_semantics<parallel>], iteration_bounds = array<i64: 1>, scalar_prefetch = 0 : i64, scratch_operands = 0 : i64, tpu.core_type = #tpu.core_type<tc>, window_params = [{transform_indices = @transform_0, window_bounds = array<i64: 8, 32>}, {pipeline_mode = #tpu.pipeline_mode<synchronous>, transform_indices = @transform_1, window_bounds = array<i64: 32, 128>}, {pipeline_mode = #tpu.pipeline_mode<synchronous>, transform_indices = @transform_2, window_bounds = array<i64: 1, 128>}, {pipeline_mode = #tpu.pipeline_mode<synchronous>, transform_indices = @transform_3, window_bounds = array<i64: 128, 256>}, {pipeline_mode = #tpu.pipeline_mode<synchronous>, transform_indices = @transform_4, window_bounds = array<i64: 1, 256>}, {pipeline_mode = #tpu.pipeline_mode<synchronous>, transform_indices = @transform_5, window_bounds = array<i64: 256, 128>}, {pipeline_mode = #tpu.pipeline_mode<synchronous>, transform_indices = @transform_6, window_bounds = array<i64: 1, 128>}, {pipeline_mode = #tpu.pipeline_mode<synchronous>, transform_indices = @transform_7, window_bounds = array<i64: 128, 128>}, {pipeline_mode = #tpu.pipeline_mode<synchronous>, transform_indices = @transform_8, window_bounds = array<i64: 1, 128>}, {transform_indices = @transform_9, window_bounds = array<i64: 8, 8>}]} {
    %c0 = arith.constant 0 : index
    %c0_0 = arith.constant 0 : index
    %0 = vector.load %arg1[%c0, %c0_0] : memref<8x32xf32, #tpu.memory_space<vmem>>, vector<8x32xf32>
    %1 = arith.truncf %0 : vector<8x32xf32> to vector<8x32xbf16>
    %c0_1 = arith.constant 0 : index
    %c0_2 = arith.constant 0 : index
    %2 = vector.load %arg2[%c0_1, %c0_2] : memref<32x128xbf16, #tpu.memory_space<vmem>>, vector<32x128xbf16>
    %cst = arith.constant dense<0.000000e+00> : vector<8x128xf32>
    %3 = tpu.matmul %1, %2, %cst {dimension_numbers = #tpu.dot_dimension_numbers<[1], [0], [0], [1], [0, 0, 1, 1], [], []>} : vector<8x32xbf16>, vector<32x128xbf16>, vector<8x128xf32> -> vector<8x128xf32>
    %c0_3 = arith.constant 0 : index
    %c0_4 = arith.constant 0 : index
    %4 = vector.load %arg3[%c0_3, %c0_4] : memref<1x128xf32, #tpu.memory_space<vmem>>, vector<1x128xf32>
    %5 = vector.broadcast %4 : vector<1x128xf32> to vector<8x128xf32>
    %6 = arith.addf %3, %5 : vector<8x128xf32>
    %cst_5 = arith.constant 0.000000e+00 : f32
    %7 = vector.broadcast %cst_5 : f32 to vector<8x128xf32>
    %8 = arith.maximumf %6, %7 : vector<8x128xf32>
    %9 = arith.truncf %8 : vector<8x128xf32> to vector<8x128xbf16>
    %c0_6 = arith.constant 0 : index
    %c0_7 = arith.constant 0 : index
    %10 = vector.load %arg4[%c0_6, %c0_7] : memref<128x256xbf16, #tpu.memory_space<vmem>>, vector<128x256xbf16>
    %cst_8 = arith.constant dense<0.000000e+00> : vector<8x256xf32>
    %11 = tpu.matmul %9, %10, %cst_8 {dimension_numbers = #tpu.dot_dimension_numbers<[1], [0], [0], [1], [0, 0, 1, 1], [], []>} : vector<8x128xbf16>, vector<128x256xbf16>, vector<8x256xf32> -> vector<8x256xf32>
    %c0_9 = arith.constant 0 : index
    %c0_10 = arith.constant 0 : index
    %12 = vector.load %arg5[%c0_9, %c0_10] : memref<1x256xf32, #tpu.memory_space<vmem>>, vector<1x256xf32>
    %13 = vector.broadcast %12 : vector<1x256xf32> to vector<8x256xf32>
    %14 = arith.addf %11, %13 : vector<8x256xf32>
    %cst_11 = arith.constant 0.000000e+00 : f32
    %15 = vector.broadcast %cst_11 : f32 to vector<8x256xf32>
    %16 = arith.cmpf ogt, %14, %15 : vector<8x256xf32>
    %cst_12 = arith.constant 0.00999999977 : f32
    %17 = vector.broadcast %cst_12 : f32 to vector<8x256xf32>
    %18 = arith.mulf %17, %14 : vector<8x256xf32>
    %19 = arith.select %16, %14, %18 : vector<8x256xi1>, vector<8x256xf32>
    %20 = arith.truncf %19 : vector<8x256xf32> to vector<8x256xbf16>
    %c0_13 = arith.constant 0 : index
    %c0_14 = arith.constant 0 : index
    %21 = vector.load %arg6[%c0_13, %c0_14] : memref<256x128xbf16, #tpu.memory_space<vmem>>, vector<256x128xbf16>
    %cst_15 = arith.constant dense<0.000000e+00> : vector<8x128xf32>
    %22 = tpu.matmul %20, %21, %cst_15 {dimension_numbers = #tpu.dot_dimension_numbers<[1], [0], [0], [1], [0, 0, 1, 1], [], []>} : vector<8x256xbf16>, vector<256x128xbf16>, vector<8x128xf32> -> vector<8x128xf32>
    %c0_16 = arith.constant 0 : index
    %c0_17 = arith.constant 0 : index
    %23 = vector.load %arg7[%c0_16, %c0_17] : memref<1x128xf32, #tpu.memory_space<vmem>>, vector<1x128xf32>
    %24 = vector.broadcast %23 : vector<1x128xf32> to vector<8x128xf32>
    %25 = arith.addf %22, %24 : vector<8x128xf32>
    %cst_18 = arith.constant 0.000000e+00 : f32
    %26 = vector.broadcast %cst_18 : f32 to vector<8x128xf32>
    %27 = arith.cmpf ogt, %25, %26 : vector<8x128xf32>
    %cst_19 = arith.constant 0.00999999977 : f32
    %28 = vector.broadcast %cst_19 : f32 to vector<8x128xf32>
    %29 = arith.mulf %28, %25 : vector<8x128xf32>
    %30 = arith.select %27, %25, %29 : vector<8x128xi1>, vector<8x128xf32>
    %31 = arith.truncf %30 : vector<8x128xf32> to vector<8x128xbf16>
    %c0_20 = arith.constant 0 : index
    %c0_21 = arith.constant 0 : index
    %32 = vector.load %arg8[%c0_20, %c0_21] : memref<128x128xbf16, #tpu.memory_space<vmem>>, vector<128x128xbf16>
    %cst_22 = arith.constant dense<0.000000e+00> : vector<8x128xf32>
    %33 = tpu.matmul %31, %32, %cst_22 {dimension_numbers = #tpu.dot_dimension_numbers<[1], [0], [0], [1], [0, 0, 1, 1], [], []>} : vector<8x128xbf16>, vector<128x128xbf16>, vector<8x128xf32> -> vector<8x128xf32>
    %c0_23 = arith.constant 0 : index
    %c0_24 = arith.constant 0 : index
    %34 = vector.load %arg9[%c0_23, %c0_24] : memref<1x128xf32, #tpu.memory_space<vmem>>, vector<1x128xf32>
    %35 = vector.broadcast %34 : vector<1x128xf32> to vector<8x128xf32>
    %36 = arith.addf %33, %35 : vector<8x128xf32>
    %cst_25 = arith.constant dense<0xFF800000> : vector<8xf32>
    %37 = vector.multi_reduction <maximumf>, %36, %cst_25 [1] : vector<8x128xf32> to vector<8xf32>
    %38 = vector.shape_cast %37 : vector<8xf32> to vector<8x1xf32>
    %39 = vector.broadcast %38 : vector<8x1xf32> to vector<8x128xf32>
    %40 = arith.subf %36, %39 : vector<8x128xf32>
    %41 = math.exp %40 : vector<8x128xf32>
    %cst_26 = arith.constant dense<0.000000e+00> : vector<8xf32>
    %42 = vector.multi_reduction <add>, %41, %cst_26 [1] : vector<8x128xf32> to vector<8xf32>
    %43 = vector.shape_cast %42 : vector<8xf32> to vector<8x1xf32>
    %44 = tpu.reciprocal %43 {approx = true} : vector<8x1xf32> -> vector<8x1xf32>
    %45 = vector.broadcast %44 : vector<8x1xf32> to vector<8x128xf32>
    %46 = arith.mulf %41, %45 : vector<8x128xf32>
    %47 = vector.extract_strided_slice %46 {offsets = [0, 0], sizes = [8, 8], strides = [1, 1]} : vector<8x128xf32> to vector<8x8xf32>
    %c0_27 = arith.constant 0 : index
    %c0_28 = arith.constant 0 : index
    %48 = vector.load %arg10[%c0_27, %c0_28] : memref<8x8xf32, #tpu.memory_space<vmem>>, vector<8x8xf32>
    tpu.vector_store %arg10[%c0_27, %c0_28], %47 {strides = array<i32>} : memref<8x8xf32, #tpu.memory_space<vmem>>, vector<8x8xf32>,
    return
  }
  func.func @transform_0(%arg0: i32) -> (i32, i32) {
    %c0_i32 = arith.constant 0 : i32
    %c0_i32_0 = arith.constant 0 : i32
    return %arg0, %c0_i32 : i32, i32
  }
  func.func @transform_1(%arg0: i32) -> (i32, i32) {
    %c0_i32 = arith.constant 0 : i32
    %c0_i32_0 = arith.constant 0 : i32
    %c0_i32_1 = arith.constant 0 : i32
    return %c0_i32, %c0_i32_0 : i32, i32
  }
  func.func @transform_2(%arg0: i32) -> (i32, i32) {
    %c0_i32 = arith.constant 0 : i32
    %c0_i32_0 = arith.constant 0 : i32
    %c0_i32_1 = arith.constant 0 : i32
    return %c0_i32, %c0_i32_0 : i32, i32
  }
  func.func @transform_3(%arg0: i32) -> (i32, i32) {
    %c0_i32 = arith.constant 0 : i32
    %c0_i32_0 = arith.constant 0 : i32
    %c0_i32_1 = arith.constant 0 : i32
    return %c0_i32, %c0_i32_0 : i32, i32
  }
  func.func @transform_4(%arg0: i32) -> (i32, i32) {
    %c0_i32 = arith.constant 0 : i32
    %c0_i32_0 = arith.constant 0 : i32
    %c0_i32_1 = arith.constant 0 : i32
    return %c0_i32, %c0_i32_0 : i32, i32
  }
  func.func @transform_5(%arg0: i32) -> (i32, i32) {
    %c0_i32 = arith.constant 0 : i32
    %c0_i32_0 = arith.constant 0 : i32
    %c0_i32_1 = arith.constant 0 : i32
    return %c0_i32, %c0_i32_0 : i32, i32
  }
  func.func @transform_6(%arg0: i32) -> (i32, i32) {
    %c0_i32 = arith.constant 0 : i32
    %c0_i32_0 = arith.constant 0 : i32
    %c0_i32_1 = arith.constant 0 : i32
    return %c0_i32, %c0_i32_0 : i32, i32
  }
  func.func @transform_7(%arg0: i32) -> (i32, i32) {
    %c0_i32 = arith.constant 0 : i32
    %c0_i32_0 = arith.constant 0 : i32
    %c0_i32_1 = arith.constant 0 : i32
    return %c0_i32, %c0_i32_0 : i32, i32
  }
  func.func @transform_8(%arg0: i32) -> (i32, i32) {
    %c0_i32 = arith.constant 0 : i32
    %c0_i32_0 = arith.constant 0 : i32
    %c0_i32_1 = arith.constant 0 : i32
    return %c0_i32, %c0_i32_0 : i32, i32
  }
  func.func @transform_9(%arg0: i32) -> (i32, i32) {
    %c0_i32 = arith.constant 0 : i32
    %c0_i32_0 = arith.constant 0 : i32
    return %arg0, %c0_i32 : i32, i32
  }
}

</mosaic_0001>

<bundles_post_ra>
// kernel: tpu_custom_call.1
= control target key start
LH: loop header
LB: loop body
LE: loop exit
PB: predicated region body
PF: predicated region fallthrough
CT: control target
= control target key end

     0   :  { %14 = vsyncpa [#allocation3], 0  ;;  %s1131_s0 = inlined_call_operand.hbm [shape: f32[8,32], index: 0, kind: input, shape index: {}]   ;;  %s1132_s1 = inlined_call_operand.hbm [shape: bf16[32,128], index: 1, kind: input, shape index: {}]   ;;  %s1133_s2 = inlined_call_operand.vmem [shape: f32[1,128], index: 2, kind: input, shape index: {}]   ;;  %s1134_s3 = inlined_call_operand.hbm [shape: bf16[128,256], index: 3, kind: input, shape index: {}]   ;;  %s1135_s4 = inlined_call_operand.vmem [shape: f32[1,256], index: 4, kind: input, shape index: {}]   ;;  %s1136_s5 = inlined_call_operand.hbm [shape: bf16[256,128], index: 5, kind: input, shape index: {}]   ;;  %s1137_s6 = inlined_call_operand.vmem [shape: f32[1,128], index: 6, kind: input, shape index: {}]   ;;  %s1138_s7 = inlined_call_operand.hbm [shape: bf16[128,128], index: 7, kind: input, shape index: {}]   ;;  %s1139_s8 = inlined_call_operand.vmem [shape: f32[1,128], index: 8, kind: input, shape index: {}]   ;;  %s1140_s9 = inlined_call_operand.hbm [shape: f32[8,8], index: 9, kind: output, shape index: {}]  }
   0x1   :  { %15 = vsyncpa [#allocation6], 0 }
   0x2   :  { %16 = vsyncpa [#allocation9], 0 }
   0x3   :  { %17 = vsyncpa [#allocation4], 0  ;;  %s961_s30 = smov [#allocation5]   ;;  %s821_s13 = scalar_lea.hbm %s1132_s1, 256 }
   0x4   :  { %s33_s10 = sshll.u32 %s961_s30, 4  ;;  %p822_p0 = scmp.ne.s32.totalorder %s1132_s1, %s821_s13  ;;  %s34_s10 = int_to_ptr.vmem [resolvable:$true] %s33_s10 }
   0x5   :  { %p825_p1 = scmp.lt.u32.totalorder %s821_s13, %s1132_s1 }
   0x7   :  { %p827_p2 = pnand %p825_p1, %p822_p0 }
   0x9   :  { %830 = shalt.err (!%p827_p2)
}
   0xa   :  { %s831_s18 = scalar_lea.vmem %s34_s10, 256  ;;  %p836_p4 = scmp.lt.s32.totalorder %s34_s10, %s34_s10 }
   0xb   :  { %p832_p3 = scmp.ne.s32.totalorder %s34_s10, %s831_s18  ;;  %p837_p5 = scmp.lt.s32.totalorder %s831_s18, %s831_s18 }
   0xd   :  { %p838_p6 = por %p837_p5, %p836_p4 }
   0xf   :  { %p839_p7 = pnand %p838_p6, %p832_p3 }
  0x11   :  { %842 = shalt.err (!%p839_p7)
}
  0x12   :  { %s962_s19 = smov 64   ;;  %s963_s20 = smov 4  }
  0x13   :  { %39 = dma.hbm_to_vmem [thread:$0]  %s1132_s1, 256, %s34_s10, [#allocation6], %s962_s19, %s962_s19, %s963_s20  }
  0x14   :  { %s964_s23 = smov [#allocation8]   ;;  %s965_s25 = smov [#allocation2]  }
  0x15   :  { %s61_s24 = sshll.u32 %s964_s23, 4  ;;  %s24_s26 = sshll.u32 %s965_s25, 4  ;;  %s62_s24 = int_to_ptr.vmem [resolvable:$true] %s61_s24  ;;  %s25_s26 = int_to_ptr.vmem [resolvable:$true] %s24_s26 }
  0x16   :  { %s843_s29 = scalar_lea.hbm %s1136_s5, 2048 }
  0x17   :  { %p844_p8 = scmp.ne.s32.totalorder %s1136_s5, %s843_s29  ;;  %p847_p9 = scmp.lt.u32.totalorder %s843_s29, %s1136_s5 }
  0x19   :  { %p849_p10 = pnand %p847_p9, %p844_p8 }
  0x1b   :  { %852 = shalt.err (!%p849_p10)
}
  0x1c   :  { %s853_s1 = scalar_lea.vmem %s62_s24, 2048  ;;  %p858_p12 = scmp.lt.s32.totalorder %s62_s24, %s62_s24 }
  0x1d   :  { %p854_p11 = scmp.ne.s32.totalorder %s62_s24, %s853_s1  ;;  %p859_p13 = scmp.lt.s32.totalorder %s853_s1, %s853_s1 }
  0x1f   :  { %p860_p0 = por %p859_p13, %p858_p12 }
  0x21   :  { %p861_p1 = pnand %p860_p0, %p854_p11 }
  0x23   :  { %864 = shalt.err (!%p861_p1)
}
  0x24   :  { %67 = dma.hbm_to_vmem [thread:$0]  %s1136_s5, 2048, %s62_s24, [#allocation9], %s962_s19, %s962_s19, %s963_s20  }
  0x25   :  { %s865_s17 = scalar_lea.hbm %s1131_s0, 128 }
  0x26   :  { %p866_p2 = scmp.ne.s32.totalorder %s1131_s0, %s865_s17  ;;  %p869_p3 = scmp.lt.u32.totalorder %s865_s17, %s1131_s0 }
  0x28   :  { %p871_p4 = pnand %p869_p3, %p866_p2 }
  0x2a   :  { %874 = shalt.err (!%p871_p4)
}
  0x2b   :  { %s875_s25 = scalar_lea.vmem %s25_s26, 128  ;;  %p880_p6 = scmp.lt.s32.totalorder %s25_s26, %s25_s26 }
  0x2c   :  { %p876_p5 = scmp.ne.s32.totalorder %s25_s26, %s875_s25  ;;  %p881_p7 = scmp.lt.s32.totalorder %s875_s25, %s875_s25 }
  0x2e   :  { %p882_p8 = por %p881_p7, %p880_p6 }
  0x30   :  { %p883_p9 = pnand %p882_p8, %p876_p5 }
  0x32   :  { %886 = shalt.err (!%p883_p9)
}
  0x33   :  { %27 = dma.hbm_to_vmem [thread:$0]  %s1131_s0, 128, %s25_s26, [#allocation3]  }
  0x34   :  { %s966_s27 = smov [#allocation7]   ;;  %s887_s11 = scalar_lea.hbm %s1134_s3, 2048 }
  0x35   :  { %s47_s28 = sshll.u32 %s966_s27, 4  ;;  %p888_p10 = scmp.ne.s32.totalorder %s1134_s3, %s887_s11  ;;  %s48_s28 = int_to_ptr.vmem [resolvable:$true] %s47_s28 }
  0x36   :  { %p891_p11 = scmp.lt.u32.totalorder %s887_s11, %s1134_s3 }
  0x38   :  { %p893_p12 = pnand %p891_p11, %p888_p10 }
  0x3a   :  { %896 = shalt.err (!%p893_p12)
}
  0x3b   :  { %s897_s14 = scalar_lea.vmem %s48_s28, 2048  ;;  %p902_p0 = scmp.lt.s32.totalorder %s48_s28, %s48_s28 }
  0x3c   :  { %p898_p13 = scmp.ne.s32.totalorder %s48_s28, %s897_s14  ;;  %p903_p1 = scmp.lt.s32.totalorder %s897_s14, %s897_s14 }
  0x3e   :  { %p904_p2 = por %p903_p1, %p902_p0 }
  0x40   :  { %p905_p3 = pnand %p904_p2, %p898_p13 }
  0x42   :  { %908 = shalt.err (!%p905_p3)
}
  0x43   :  { %s967_s0 = smov 128   ;;  %s968_s26 = smov 8  }
  0x44   :  { %53 = dma.hbm_to_vmem [thread:$0]  %s1134_s3, 2048, %s48_s28, [#allocation6], %s967_s0, %s967_s0, %s968_s26  }
  0x45   :  { %s969_s17 = smov [#allocation10]   ;;  %s909_s23 = scalar_lea.hbm %s1138_s7, 1024 }
  0x46   :  { %s75_s18 = sshll.u32 %s969_s17, 4  ;;  %p910_p4 = scmp.ne.s32.totalorder %s1138_s7, %s909_s23  ;;  %s76_s18 = int_to_ptr.vmem [resolvable:$true] %s75_s18 }
  0x47   :  { %p913_p5 = scmp.lt.u32.totalorder %s909_s23, %s1138_s7 }
  0x49   :  { %p915_p6 = pnand %p913_p5, %p910_p4 }
  0x4b   :  { %918 = shalt.err (!%p915_p6)
}
  0x4c   :  { %s919_s29 = scalar_lea.vmem %s76_s18, 1024  ;;  %p924_p8 = scmp.lt.s32.totalorder %s76_s18, %s76_s18 }
  0x4d   :  { %p920_p7 = scmp.ne.s32.totalorder %s76_s18, %s919_s29  ;;  %p925_p9 = scmp.lt.s32.totalorder %s919_s29, %s919_s29 }
  0x4f   :  { %p926_p10 = por %p925_p9, %p924_p8 }
  0x51   :  { %p927_p11 = pnand %p926_p10, %p920_p7 }
  0x53   :  { %930 = shalt.err (!%p927_p11)
}
  0x54   :  { %81 = dma.hbm_to_vmem [thread:$0]  %s1138_s7, 1024, %s76_s18, [#allocation9], %s962_s19, %s962_s19, %s963_s20  }
  0x55   :  { %953 = dma.done.wait [#allocation3], 128  }
  0x56   :  { %954 = vsyncadd [#allocation3], 4294967168 }
  0x57   :  { %955 = dma.done.wait [#allocation6], 2304  }
  0x58   :  { %956 = vsyncadd [#allocation6], 4294964992 }
  0x59   :  { %957 = dma.done.wait [#allocation9], 3072  }
  0x5a   :  { %958 = vsyncadd [#allocation9], 4294964224  ;;  %v970_v0 = vmov 0.0   ;;  %vm971_vm0 = vmmov 0   ;;  %v767_v1 = vld [vmem:[#allocation5] sm:$0xff]   ;;  %v768_v2 = vld [vmem:[#allocation5 + $0x8] sm:$0xff]   ;;  %v189_v51 = vlaneseq }
  0x5b   :  { %726 = vmatprep.subr.bf16.mxu0 %v970_v0  ;;  %730 = vmatprep.mubr.msk.bf16.mxu0 %vm971_vm0, %v970_v0  ;;  %v100_v3 = vld [vmem:[#allocation2] sm:$0xff]  ;;  %v772_v6 = vld [vmem:[#allocation7 + $0x14] ss:$8 sps:$4 sm:$0xff]   ;;  %vm125_vm1 = vcmask 261120   ;;  %v774_v8 = vld [vmem:[#allocation7 + $0x10] ss:$8 sps:$4 sm:$0xff]  }
  0x5c   :  { %727 = vmatpush3.bf16.msra.mxu0 %v767_v1  ;;  %v769_v4 = vld [vmem:[#allocation7 + $0x4] ss:$8 sps:$4 sm:$0xff]   ;;  %v771_v5 = vld [vmem:[#allocation7] ss:$8 sps:$4 sm:$0xff]   ;;  %v101_v7 = vpack.c.bf16 %v100_v3, %v100_v3  ;;  %v778_v11 = vld [vmem:[#allocation7 + $0x34] ss:$8 sps:$4 sm:$0xff]  }
  0x5d   :  { %728 = vmatprep.subr.bf16.mxu0 %v970_v0  ;;  %279 = vmatprep.subr.bf16.mxu1 %v769_v4  ;;  %v775_v9 = vld [vmem:[#allocation7 + $0x24] ss:$8 sps:$4 sm:$0xff]   ;;  %v777_v10 = vld [vmem:[#allocation7 + $0x20] ss:$8 sps:$4 sm:$0xff]   ;;  %v780_v12 = vld [vmem:[#allocation7 + $0x30] ss:$8 sps:$4 sm:$0xff]  }
  0x5e   :  { %280 = vmatpush1.bf16.msra.mxu1 %v771_v5  ;;  %v781_v13 = vld [vmem:[#allocation7 + $0x44] ss:$8 sps:$4 sm:$0xff]   ;;  %v783_v14 = vld [vmem:[#allocation7 + $0x40] ss:$8 sps:$4 sm:$0xff]   ;;  %v784_v15 = vld [vmem:[#allocation7 + $0x54] ss:$8 sps:$4 sm:$0xff]  }
  0x5f   :  { %281 = vmatprep.subr.bf16.mxu1 %v772_v6  ;;  %v786_v16 = vld [vmem:[#allocation7 + $0x50] ss:$8 sps:$4 sm:$0xff]   ;;  %v787_v17 = vld [vmem:[#allocation7 + $0x64] ss:$8 sps:$4 sm:$0xff]   ;;  %v789_v18 = vld [vmem:[#allocation7 + $0x60] ss:$8 sps:$4 sm:$0xff]  }
  0x60   :  { %729 = vmatpush3.bf16.msra.mxu0 %v768_v2  ;;  %v790_v19 = vld [vmem:[#allocation7 + $0x74] ss:$8 sps:$4 sm:$0xff]   ;;  %v792_v20 = vld [vmem:[#allocation7 + $0x70] ss:$8 sps:$4 sm:$0xff]   ;;  %v972_v21 = vmov 0   ;;  %v793_v22 = vld [vmem:[#allocation8 + $0x40] sm:$0xff]  }
  0x61   :  { %311 = vmatprep.mubr.bf16.mxu1 %v972_v21  ;;  %v794_v23 = vld [vmem:[#allocation8] sm:$0xff]   ;;  %v795_v24 = vld [vmem:[#allocation8 + $0x48] sm:$0xff]   ;;  %695 = vmatprep.subr.bf16.mxu0 %v793_v22  ;;  %v797_v26 = vld [vmem:[#allocation8 + $0x50] sm:$0xff]   ;;  %v190_v52 = vshrl.u32 %v189_v51, 7  ;;  %vm627_vm5 = vcmask 64512  }
  0x62   :  { %282 = vmatpush1.bf16.msra.mxu1 %v774_v8  ;;  %v796_v25 = vld [vmem:[#allocation8 + $0x8] sm:$0xff]   ;;  %v798_v27 = vld [vmem:[#allocation8 + $0x10] sm:$0xff]   ;;  %v799_v28 = vld [vmem:[#allocation8 + $0x58] sm:$0xff]  }
  0x63   :  { %731 = vmatmul.mubr.msk.bf16.vlgmr.msra.gmra.mrb[0].mxu0 %vm125_vm1, %v101_v7  ;;  %283 = vmatprep.subr.bf16.mxu1 %v775_v9  ;;  %v800_v29 = vld [vmem:[#allocation8 + $0x18] sm:$0xff]   ;;  %v801_v30 = vld [vmem:[#allocation8 + $0x60] sm:$0xff]   ;;  %v803_v32 = vld [vmem:[#allocation8 + $0x68] sm:$0xff]   ;;  %v191_v53 = vsub.s32 0, %v190_v52  ;;  %v195_v55 = vsub.s32 1, %v190_v52 }
  0x64   :  { %696 = vmatpush3.bf16.msra.mxu0 %v794_v23  ;;  %v802_v31 = vld [vmem:[#allocation8 + $0x20] sm:$0xff]   ;;  %v804_v33 = vld [vmem:[#allocation8 + $0x28] sm:$0xff]   ;;  %v805_v42 = vld [vmem:[#allocation8 + $0x70] sm:$0xff]  }
  0x65   :  { %697 = vmatprep.subr.bf16.mxu0 %v795_v24  ;;  %v646_v34 = vld [vmem:[%s1133_s2] ss:$0 sm:$0xff]  ;;  %v806_v43 = vld [vmem:[#allocation8 + $0x30] sm:$0xff]   ;;  %v807_v44 = vld [vmem:[#allocation8 + $0x78] sm:$0xff]  }
  0x66   :  { %284 = vmatpush1.bf16.msra.mxu1 %v777_v10  ;;  %v808_v45 = vld [vmem:[#allocation8 + $0x38] sm:$0xff]   ;;  %v809_v46 = vld [vmem:[#allocation10] sm:$0xff]   ;;  %v810_v47 = vld [vmem:[#allocation10 + $0x8] sm:$0xff]  }
  0x67   :  { %285 = vmatprep.subr.bf16.mxu1 %v778_v11  ;;  %v811_v48 = vld [vmem:[#allocation10 + $0x10] sm:$0xff]   ;;  %v812_v49 = vld [vmem:[#allocation10 + $0x18] sm:$0xff]   ;;  %v813_v50 = vld [vmem:[#allocation10 + $0x20] sm:$0xff]  }
  0x68   :  { %698 = vmatpush3.bf16.msra.mxu0 %v796_v25  ;;  %v187_v54 = vld [vmem:[%s1135_s4] sm:$0x3]  ;;  %v815_v8 = vld [vmem:[#allocation10 + $0x30] sm:$0xff]   ;;  %v816_v9 = vld [vmem:[#allocation10 + $0x38] sm:$0xff]  }
  0x69   :  { %699 = vmatprep.subr.bf16.mxu0 %v797_v26  ;;  %v192_v56 = vrot.slane %v187_v54, %v191_v53  ;;  %v196_v57 = vrot.slane %v187_v54, %v195_v55  ;;  %v814_v7 = vld [vmem:[#allocation10 + $0x28] sm:$0xff]  }
  0x6a   :  { %286 = vmatpush1.bf16.msra.mxu1 %v780_v12  ;;  %v666_v11 = vld [vmem:[%s1137_s6] ss:$0 sm:$0xff]  ;;  %s973_s6 = smov [#allocation11]  }
  0x6b   :  { %287 = vmatprep.subr.bf16.mxu1 %v781_v13  ;;  %s635_s13 = sshll.u32 %s973_s6, 4  ;;  %s636_s13 = int_to_ptr.vmem [resolvable:$true] %s635_s13 }
  0x6c   :  { %700 = vmatpush3.bf16.msra.mxu0 %v798_v27  ;;  %p936_p13 = scmp.lt.s32.totalorder %s636_s13, %s636_s13 }
  0x6d   :  { %701 = vmatprep.subr.bf16.mxu0 %v799_v28 }
  0x6e   :  { %288 = vmatpush1.bf16.msra.mxu1 %v783_v14 }
  0x6f   :  { %289 = vmatprep.subr.bf16.mxu1 %v784_v15 }
  0x70   :  { %702 = vmatpush3.bf16.msra.mxu0 %v800_v29 }
  0x71   :  { %703 = vmatprep.subr.bf16.mxu0 %v801_v30 }
  0x72   :  { %290 = vmatpush1.bf16.msra.mxu1 %v786_v16 }
  0x73   :  { %291 = vmatprep.subr.bf16.mxu1 %v787_v17 }
  0x74   :  { %704 = vmatpush3.bf16.msra.mxu0 %v802_v31 }
  0x75   :  { %705 = vmatprep.subr.bf16.mxu0 %v803_v32 }
  0x76   :  { %292 = vmatpush1.bf16.msra.mxu1 %v789_v18 }
  0x77   :  { %293 = vmatprep.subr.bf16.mxu1 %v790_v19 }
  0x78   :  { %706 = vmatpush3.bf16.msra.mxu0 %v804_v33 }
  0x79   :  { %707 = vmatprep.subr.bf16.mxu0 %v805_v42 }
  0x7a   :  { %294 = vmatpush1.bf16.msra.mxu1 %v792_v20 }
  0x7b   :  { %734 = vmatprep.subr.bf16.mxu1 %v970_v0 }
  0x7c   :  { %708 = vmatpush3.bf16.msra.mxu0 %v806_v43 }
  0x7d   :  { %709 = vmatprep.subr.bf16.mxu0 %v807_v44 }
  0x80   :  { %710 = vmatpush3.bf16.msra.mxu0 %v808_v45 }
 0x136   :  { %v163_v35 = vpop.f32.mrb[0].mxu0 }
 0x137   :  { %v164_v36 = vadd.f32 %v646_v34, %v163_v35  ;;  %v732_v37 = vpop.f32.mrb[1].mxu0 }
 0x138   :  { %v166_v38 = vpop.f32.mrb[2].mxu0 }
 0x139   :  { %v169_v39 = vmax.f32 %v164_v36, 0.0  ;;  %v733_v40 = vpop.f32.mrb[3].mxu0 }
 0x13b   :  { %v170_v41 = vpack.c.bf16 %v169_v39, %v169_v39 }
 0x13d   :  { %312 = vmatmul.mubr.bf16.vlgmr.msra.gmra.mrb[0].mxu1 %v170_v41 }
 0x13e   :  { %750 = vmatprep.mubr.msk.bf16.mxu1 %vm971_vm0, %v970_v0  ;;  %735 = vmatpush3.bf16.msra.mxu1 %v809_v46 }
 0x13f   :  { %736 = vmatprep.subr.bf16.mxu1 %v970_v0 }
 0x142   :  { %737 = vmatpush3.bf16.msra.mxu1 %v810_v47 }
 0x143   :  { %738 = vmatprep.subr.bf16.mxu1 %v970_v0 }
 0x146   :  { %739 = vmatpush3.bf16.msra.mxu1 %v811_v48 }
 0x147   :  { %740 = vmatprep.subr.bf16.mxu1 %v970_v0 }
 0x14a   :  { %741 = vmatpush3.bf16.msra.mxu1 %v812_v49 }
 0x14b   :  { %742 = vmatprep.subr.bf16.mxu1 %v970_v0 }
 0x14e   :  { %743 = vmatpush3.bf16.msra.mxu1 %v813_v50 }
 0x14f   :  { %744 = vmatprep.subr.bf16.mxu1 %v970_v0 }
 0x152   :  { %745 = vmatpush3.bf16.msra.mxu1 %v814_v7 }
 0x153   :  { %746 = vmatprep.subr.bf16.mxu1 %v970_v0 }
 0x156   :  { %747 = vmatpush3.bf16.msra.mxu1 %v815_v8 }
 0x157   :  { %748 = vmatprep.subr.bf16.mxu1 %v970_v0  ;;  %v683_v0 = vld [vmem:[%s1139_s8] ss:$0 sm:$0xff]  ;;  %s931_s8 = scalar_lea.vmem %s636_s13, 128 }
 0x158   :  { %p932_p12 = scmp.ne.s32.totalorder %s636_s13, %s931_s8  ;;  %p937_p0 = scmp.lt.s32.totalorder %s931_s8, %s931_s8 }
 0x15a   :  { %749 = vmatpush3.bf16.msra.mxu1 %v816_v9  ;;  %p938_p1 = por %p937_p0, %p936_p13 }
 0x15c   :  { %p939_p2 = pnand %p938_p1, %p932_p12 }
 0x210   :  { %v313_v58 = vpop.f32.mrb[0].mxu1 }
 0x211   :  { %v314_v59 = vadd.f32 %v313_v58, %v192_v56  ;;  %v315_v60 = vpop.f32.mrb[1].mxu1 }
 0x212   :  { %v316_v61 = vadd.f32 %v315_v60, %v196_v57  ;;  %v317_v62 = vpop.f32.mrb[2].mxu1 }
 0x213   :  { %vm320_vm2 = vcmp.gt.f32.partialorder %v314_v59, 0.0  ;;  %v322_v63 = vmul.f32 0.01, %v314_v59  ;;  %v318_v1 = vpop.f32.mrb[3].mxu1 }
 0x214   :  { %vm321_vm3 = vcmp.gt.f32.partialorder %v316_v61, 0.0  ;;  %v323_v2 = vmul.f32 0.01, %v316_v61 }
 0x215   :  { %v324_v3 = vsel %vm320_vm2, %v314_v59, %v322_v63 }
 0x216   :  { %v325_v4 = vsel %vm321_vm3, %v316_v61, %v323_v2  ;;  %v326_v6 = vpack.c.bf16 %v324_v3, %v324_v3 }
 0x217   :  { %v327_v5 = vpack.c.bf16 %v325_v4, %v325_v4 }
 0x219   :  { %495 = vmatprep.mubr.bf16.mxu0 %v327_v5 }
 0x21a   :  { %496 = vmatmul.mubr.bf16.vlgmr.msra.gmra.mrb[4].mxu0 %v326_v6 }
 0x2ed   :  { %v711_v10 = vpop.f32.mrb[4].mxu0 }
 0x2ee   :  { %v712_v12 = vpop.f32.mrb[5].mxu0 }
 0x2ef   :  { %v713_v13 = vadd.f32 %v712_v12, %v711_v10  ;;  %v714_v14 = vpop.f32.mrb[6].mxu0 }
 0x2f0   :  { %v715_v15 = vpop.f32.mrb[7].mxu0 }
 0x2f1   :  { %v498_v16 = vadd.f32 %v713_v13, %v666_v11 }
 0x2f3   :  { %vm503_vm4 = vcmp.gt.f32.partialorder %v498_v16, 0.0  ;;  %v504_v17 = vmul.f32 0.01, %v498_v16 }
 0x2f5   :  { %v505_v18 = vsel %vm503_vm4, %v498_v16, %v504_v17 }
 0x2f6   :  { %v506_v19 = vpack.c.bf16 %v505_v18, %v505_v18 }
 0x2f8   :  { %751 = vmatmul.mubr.bf16.vlgmr.msra.gmra.mrb[4].mxu1 %v506_v19 }
 0x3cb   :  { %v612_v20 = vpop.f32.mrb[4].mxu1 }
 0x3cc   :  { %v613_v21 = vadd.f32 %v683_v0, %v612_v20  ;;  %v752_v22 = vpop.f32.mrb[5].mxu1 }
 0x3cd   :  { %v615_v23 = vpop.f32.mrb[6].mxu1 }
 0x3ce   :  { %618 = vmax.xlane.f32.xlu0 %v613_v21  ;;  %v753_v24 = vpop.f32.mrb[7].mxu1 }
 0x45b   :  { %v619_v25 = vpop.xlane.xlu0 %618 }
 0x45c   :  { %v620_v26 = vsub.f32 %v613_v21, %v619_v25 }
 0x45e   :  { %v621_v27 = vmul.f32 1.442695, %v620_v26 }
 0x460   :  { %817 = vpow2.f32 %v621_v27 }
 0x46a   :  { %v818_v28 = vpop.eup %817 }
 0x46b   :  { %623 = vadd.xlane.f32.xlu0 %v818_v28 }
 0x4f8   :  { %v624_v29 = vpop.xlane.xlu0 %623 }
 0x4f9   :  { %819 = vrcp.f32 %v624_v29 }
 0x503   :  { %v820_v30 = vpop.eup %819 }
 0x504   :  { %v626_v31 = vmul.f32 %v820_v30, %v818_v28 }
 0x506   :  { %628 = vst.msk [vmem:[#allocation11] sm:$0xff] %vm627_vm5, %v626_v31 }
 0x507   :  { %942 = shalt.err (!%p939_p2)
}
 0x508   :  { %s943_s14 = scalar_lea.hbm %s1140_s9, 128 }
 0x509   :  { %p944_p3 = scmp.ne.s32.totalorder %s1140_s9, %s943_s14  ;;  %p947_p4 = scmp.lt.u32.totalorder %s943_s14, %s1140_s9 }
 0x50b   :  { %p949_p5 = pnand %p947_p4, %p944_p3 }
 0x50d   :  { %952 = shalt.err (!%p949_p5)
}
 0x50e   :  { %638 = dma.vmem_to_hbm [thread:$0]  %s636_s13, 128, %s1140_s9, [#allocation4]  }
 0x50f   :  { %959 = dma.done.wait [#allocation4], 128  }
 0x510   :  { %960 = vsyncadd [#allocation4], 4294967168 }
 0x511   :  { %642 = vsyncpa [#allocation3], 1 }
 0x512   :  { %643 = vsyncpa [#allocation6], 1 }
 0x513   :  { %644 = vsyncpa [#allocation9], 1 }
 0x514   :  { %645 = vsyncpa [#allocation4], 1 }

</bundles_post_ra>
